<compile_context>
chip_gen: v6e
topology: v6e:2x2x1
jax: 0.10.0
libtpu: 0.0.40
codegen_flags: <defaults>
</compile_context>

<pallas_src>
import math
import functools

import jax
import jax.numpy as jnp
from jax.experimental import pallas as pl
from jax.experimental.pallas import tpu as pltpu


def _traj_pos_enc_kernel(x_ref, pe_ref, w1_ref, b1_ref, w2_ref, b2_ref,
                         o_ref, *, trajectory_strength):
    x = x_ref[...]                                   # (tS, D) f32
    # trajectory_net: Linear(D, D//2) -> ReLU -> Linear(D//2, D) -> Tanh
    # bf16 MXU matmuls with f32 accumulation; f32 elementwise epilogue.
    h = jnp.dot(x.astype(jnp.bfloat16), w1_ref[...],
                preferred_element_type=jnp.float32) + b1_ref[...]
    h = jnp.maximum(h, 0.0)                          # ReLU (f32, VPU)
    t = jnp.dot(h.astype(jnp.bfloat16), w2_ref[...],
                preferred_element_type=jnp.float32) + b2_ref[...]
    t = jnp.tanh(t) * trajectory_strength            # Tanh (f32, EUP) * strength
    # out = x + (pe + trajectory_adjustments)
    o_ref[...] = x + pe_ref[...] + t


def make_sinusoidal_pe(max_seq_len: int, model_dim: int) -> jnp.ndarray:
    """Same construction as the PyTorch module's `pe` buffer (even model_dim)."""
    position = jnp.arange(max_seq_len, dtype=jnp.float32)[:, None]        # (L, 1)
    div_term = jnp.exp(
        jnp.arange(0, model_dim, 2, dtype=jnp.float32)
        * (-math.log(10000.0) / model_dim))                               # (D/2,)
    sin = jnp.sin(position * div_term)                                    # (L, D/2)
    cos = jnp.cos(position * div_term)                                    # (L, D/2)
    # interleave: pe[:, 0::2] = sin, pe[:, 1::2] = cos
    pe = jnp.stack([sin, cos], axis=-1).reshape(max_seq_len, model_dim)
    return pe


def trajectory_position_encoding(token_embeddings, pe_full, w1, b1, w2, b2,
                                 trajectory_strength: float = 0.1,
                                 seq_tile: int = 256):
    """token_embeddings: [B, S, D] float32. Returns [B, S, D] float32."""
    B, S, D = token_embeddings.shape
    H = w1.shape[1]

    # --- glue: choose seq tile, pad S if needed (plain JAX, outside kernel) ---
    tS = min(seq_tile, S)
    n_s = pl.cdiv(S, tS)
    S_pad = n_s * tS

    x = token_embeddings
    pe = pe_full[:S, :]                  # like self.pe[:, :seq_len, :]
    if S_pad != S:
        x = jnp.pad(x, ((0, 0), (0, S_pad - S), (0, 0)))
        pe = jnp.pad(pe, ((0, S_pad - S), (0, 0)))

    # Weights to bf16 (halves resident VMEM + feeds the MXU at bf16 rate);
    # biases stay f32 for the f32 epilogue.
    w1_b = w1.astype(jnp.bfloat16)
    w2_b = w2.astype(jnp.bfloat16)
    b1_f = b1.astype(jnp.float32).reshape(1, H)
    b2_f = b2.astype(jnp.float32).reshape(1, D)

    kernel = functools.partial(_traj_pos_enc_kernel,
                               trajectory_strength=trajectory_strength)

    # --- VMEM budget estimate (x/out/pe double-buffered + resident weights) ---
    tile_bytes = tS * D * 4
    vmem_est = (4 * tile_bytes            # x + out, 2 buffers each
                + 2 * tile_bytes          # pe, 2 buffers
                + 2 * 2 * (D * H * 2)     # w1 + w2 (bf16), 2 buffers
                + 2 * (H + D) * 4)        # biases
    vmem_limit = int(min(max(2 * vmem_est, 4 << 20), 48 << 20))

    out_padded = pl.pallas_call(
        kernel,
        out_shape=jax.ShapeDtypeStruct((B, S_pad, D), jnp.float32),
        grid_spec=pltpu.PrefetchScalarGridSpec(
            num_scalar_prefetch=0,
            # s outer, batch innermost: pe's block index is constant across the
            # inner loop so its DMA is not re-issued per batch element.
            grid=(n_s, B),
            in_specs=[
                pl.BlockSpec((pl.Squeezed(), tS, D),
                             lambda s, b: (b, s, 0)),          # x   : (tS, D) tile
                pl.BlockSpec((tS, D), lambda s, b: (s, 0)),    # pe  : per s-tile
                pl.BlockSpec((D, H),  lambda s, b: (0, 0)),    # W1  : resident
                pl.BlockSpec((1, H),  lambda s, b: (0, 0)),    # b1
                pl.BlockSpec((H, D),  lambda s, b: (0, 0)),    # W2  : resident
                pl.BlockSpec((1, D),  lambda s, b: (0, 0)),    # b2
            ],
            out_specs=pl.BlockSpec((pl.Squeezed(), tS, D),
                                   lambda s, b: (b, s, 0)),
        ),
        compiler_params=pltpu.CompilerParams(
            dimension_semantics=("parallel", "parallel"),
            vmem_limit_bytes=vmem_limit),
    )(x, pe, w1_b, b1_f, w2_b, b2_f)

    if S_pad != S:
        out_padded = out_padded[:, :S, :]
    return out_padded


def reference_jax(x, pe_full, w1, b1, w2, b2, strength):
    B, S, D = x.shape
    pe = pe_full[:S][None]                                   # (1, S, D)
    h = jnp.maximum(x @ w1 + b1, 0.0)
    t = jnp.tanh(h @ w2 + b2) * strength
    return x + pe + t


if __name__ == "__main__":
    # Lane-dense but still small shapes: [batch, seq_len, model_dim]
    B, S, D = 2, 256, 256
    H = D // 2
    MAX_SEQ_LEN = 512
    STRENGTH = 0.1
    SEQ_TILE = 128            # S is tiled -> grid = (2, 2)

    key = jax.random.PRNGKey(0)
    kx, kw1, kb1, kw2, kb2 = jax.random.split(key, 5)

    x = jax.random.normal(kx, (B, S, D), dtype=jnp.float32)

    # Deterministic parameter init (nn.Linear-like uniform bounds).
    lim1 = 1.0 / math.sqrt(D)
    lim2 = 1.0 / math.sqrt(H)
    w1 = jax.random.uniform(kw1, (D, H), jnp.float32, -lim1, lim1)
    b1 = jax.random.uniform(kb1, (1, H), jnp.float32, -lim1, lim1)
    w2 = jax.random.uniform(kw2, (H, D), jnp.float32, -lim2, lim2)
    b2 = jax.random.uniform(kb2, (1, D), jnp.float32, -lim2, lim2)

    pe_full = make_sinusoidal_pe(MAX_SEQ_LEN, D)

    out = trajectory_position_encoding(x, pe_full, w1, b1, w2, b2,
                                       trajectory_strength=STRENGTH,
                                       seq_tile=SEQ_TILE)
    out = jax.block_until_ready(out)

    ref = reference_jax(x, pe_full, w1, b1, w2, b2, STRENGTH)
    assert out.shape == (B, S, D)
    # bf16 MXU matmuls inside the kernel -> relaxed tolerance vs f32 reference
    # (trajectory term is bounded by strength * tanh, so abs error stays small).
    assert jnp.allclose(out, ref, atol=2e-2, rtol=2e-2), "mismatch vs reference"

    print("KERNEL_OK")
</pallas_src>

<mosaic_0001>
module attributes {stable_mosaic.version = 11 : i64} {
  func.func @_traj_pos_enc_kernel(%arg0: i32, %arg1: i32, %arg2: memref<1x128x256xf32, #tpu.memory_space<vmem>>, %arg3: memref<128x256xf32, #tpu.memory_space<vmem>>, %arg4: memref<256x128xbf16, #tpu.memory_space<vmem>>, %arg5: memref<1x128xf32, #tpu.memory_space<vmem>>, %arg6: memref<128x256xbf16, #tpu.memory_space<vmem>>, %arg7: memref<1x256xf32, #tpu.memory_space<vmem>>, %arg8: memref<1x128x256xf32, #tpu.memory_space<vmem>>) attributes {dimension_semantics = [#tpu.dimension_semantics<parallel>, #tpu.dimension_semantics<parallel>], iteration_bounds = array<i64: 2, 2>, scalar_prefetch = 0 : i64, scratch_operands = 0 : i64, tpu.core_type = #tpu.core_type<tc>, window_params = [{transform_indices = @transform_0, window_bounds = array<i64: 1, 128, 256>}, {transform_indices = @transform_1, window_bounds = array<i64: 128, 256>}, {pipeline_mode = #tpu.pipeline_mode<synchronous>, transform_indices = @transform_2, window_bounds = array<i64: 256, 128>}, {pipeline_mode = #tpu.pipeline_mode<synchronous>, transform_indices = @transform_3, window_bounds = array<i64: 1, 128>}, {pipeline_mode = #tpu.pipeline_mode<synchronous>, transform_indices = @transform_4, window_bounds = array<i64: 128, 256>}, {pipeline_mode = #tpu.pipeline_mode<synchronous>, transform_indices = @transform_5, window_bounds = array<i64: 1, 256>}, {transform_indices = @transform_6, window_bounds = array<i64: 1, 128, 256>}]} {
    %c0 = arith.constant 0 : index
    %c0_0 = arith.constant 0 : index
    %c0_1 = arith.constant 0 : index
    %0 = vector.load %arg2[%c0, %c0_0, %c0_1] : memref<1x128x256xf32, #tpu.memory_space<vmem>>, vector<1x128x256xf32>
    %1 = vector.shape_cast %0 : vector<1x128x256xf32> to vector<128x256xf32>
    %2 = arith.truncf %1 : vector<128x256xf32> to vector<128x256xbf16>
    %c0_2 = arith.constant 0 : index
    %c0_3 = arith.constant 0 : index
    %3 = vector.load %arg4[%c0_2, %c0_3] : memref<256x128xbf16, #tpu.memory_space<vmem>>, vector<256x128xbf16>
    %cst = arith.constant dense<0.000000e+00> : vector<128x128xf32>
    %4 = tpu.matmul %2, %3, %cst {dimension_numbers = #tpu.dot_dimension_numbers<[1], [0], [0], [1], [0, 0, 1, 1], [], []>} : vector<128x256xbf16>, vector<256x128xbf16>, vector<128x128xf32> -> vector<128x128xf32>
    %c0_4 = arith.constant 0 : index
    %c0_5 = arith.constant 0 : index
    %5 = vector.load %arg5[%c0_4, %c0_5] : memref<1x128xf32, #tpu.memory_space<vmem>>, vector<1x128xf32>
    %6 = vector.broadcast %5 : vector<1x128xf32> to vector<128x128xf32>
    %7 = arith.addf %4, %6 : vector<128x128xf32>
    %cst_6 = arith.constant 0.000000e+00 : f32
    %8 = vector.broadcast %cst_6 : f32 to vector<128x128xf32>
    %9 = arith.maximumf %7, %8 : vector<128x128xf32>
    %10 = arith.truncf %9 : vector<128x128xf32> to vector<128x128xbf16>
    %c0_7 = arith.constant 0 : index
    %c0_8 = arith.constant 0 : index
    %11 = vector.load %arg6[%c0_7, %c0_8] : memref<128x256xbf16, #tpu.memory_space<vmem>>, vector<128x256xbf16>
    %cst_9 = arith.constant dense<0.000000e+00> : vector<128x256xf32>
    %12 = tpu.matmul %10, %11, %cst_9 {dimension_numbers = #tpu.dot_dimension_numbers<[1], [0], [0], [1], [0, 0, 1, 1], [], []>} : vector<128x128xbf16>, vector<128x256xbf16>, vector<128x256xf32> -> vector<128x256xf32>
    %c0_10 = arith.constant 0 : index
    %c0_11 = arith.constant 0 : index
    %13 = vector.load %arg7[%c0_10, %c0_11] : memref<1x256xf32, #tpu.memory_space<vmem>>, vector<1x256xf32>
    %14 = vector.broadcast %13 : vector<1x256xf32> to vector<128x256xf32>
    %15 = arith.addf %12, %14 : vector<128x256xf32>
    %16 = math.tanh %15 : vector<128x256xf32>
    %cst_12 = arith.constant 1.000000e-01 : f32
    %17 = vector.broadcast %cst_12 : f32 to vector<128x256xf32>
    %18 = arith.mulf %16, %17 : vector<128x256xf32>
    %c0_13 = arith.constant 0 : index
    %c0_14 = arith.constant 0 : index
    %19 = vector.load %arg3[%c0_13, %c0_14] : memref<128x256xf32, #tpu.memory_space<vmem>>, vector<128x256xf32>
    %20 = arith.addf %1, %19 : vector<128x256xf32>
    %21 = arith.addf %20, %18 : vector<128x256xf32>
    %c0_15 = arith.constant 0 : index
    %c0_16 = arith.constant 0 : index
    %c0_17 = arith.constant 0 : index
    %22 = vector.load %arg8[%c0_15, %c0_16, %c0_17] : memref<1x128x256xf32, #tpu.memory_space<vmem>>, vector<1x128x256xf32>
    %23 = vector.shape_cast %22 : vector<1x128x256xf32> to vector<128x256xf32>
    %24 = vector.shape_cast %21 : vector<128x256xf32> to vector<1x128x256xf32>
    tpu.vector_store %arg8[%c0_15, %c0_16, %c0_17], %24 {strides = array<i32>} : memref<1x128x256xf32, #tpu.memory_space<vmem>>, vector<1x128x256xf32>,
    return
  }
  func.func @transform_0(%arg0: i32, %arg1: i32) -> (i32, i32, i32) {
    %c0_i32 = arith.constant 0 : i32
    %c0_i32_0 = arith.constant 0 : i32
    return %arg1, %arg0, %c0_i32 : i32, i32, i32
  }
  func.func @transform_1(%arg0: i32, %arg1: i32) -> (i32, i32) {
    %c0_i32 = arith.constant 0 : i32
    %c0_i32_0 = arith.constant 0 : i32
    return %arg0, %c0_i32 : i32, i32
  }
  func.func @transform_2(%arg0: i32, %arg1: i32) -> (i32, i32) {
    %c0_i32 = arith.constant 0 : i32
    %c0_i32_0 = arith.constant 0 : i32
    %c0_i32_1 = arith.constant 0 : i32
    return %c0_i32, %c0_i32_0 : i32, i32
  }
  func.func @transform_3(%arg0: i32, %arg1: i32) -> (i32, i32) {
    %c0_i32 = arith.constant 0 : i32
    %c0_i32_0 = arith.constant 0 : i32
    %c0_i32_1 = arith.constant 0 : i32
    return %c0_i32, %c0_i32_0 : i32, i32
  }
  func.func @transform_4(%arg0: i32, %arg1: i32) -> (i32, i32) {
    %c0_i32 = arith.constant 0 : i32
    %c0_i32_0 = arith.constant 0 : i32
    %c0_i32_1 = arith.constant 0 : i32
    return %c0_i32, %c0_i32_0 : i32, i32
  }
  func.func @transform_5(%arg0: i32, %arg1: i32) -> (i32, i32) {
    %c0_i32 = arith.constant 0 : i32
    %c0_i32_0 = arith.constant 0 : i32
    %c0_i32_1 = arith.constant 0 : i32
    return %c0_i32, %c0_i32_0 : i32, i32
  }
  func.func @transform_6(%arg0: i32, %arg1: i32) -> (i32, i32, i32) {
    %c0_i32 = arith.constant 0 : i32
    %c0_i32_0 = arith.constant 0 : i32
    return %arg1, %arg0, %c0_i32 : i32, i32, i32
  }
}

</mosaic_0001>

<bundles_post_ra>
// kernel: tpu_custom_call.1
= control target key start
LH: loop header
LB: loop body
LE: loop exit
PB: predicated region body
PF: predicated region fallthrough
CT: control target
= control target key end

     0   :  { %s2482_s0 = inlined_call_operand.hbm [shape: f32[2,256,256], index: 0, kind: input, shape index: {}]   ;;  %s2483_s1 = inlined_call_operand.hbm [shape: f32[256,256], index: 1, kind: input, shape index: {}]   ;;  %s2484_s2 = inlined_call_operand.hbm [shape: bf16[256,128], index: 2, kind: input, shape index: {}]   ;;  %s2485_s3 = inlined_call_operand.vmem [shape: f32[1,128], index: 3, kind: input, shape index: {}]   ;;  %s2486_s4 = inlined_call_operand.hbm [shape: bf16[128,256], index: 4, kind: input, shape index: {}]   ;;  %s2487_s5 = inlined_call_operand.vmem [shape: f32[1,256], index: 5, kind: input, shape index: {}]   ;;  %s2488_s6 = inlined_call_operand.hbm [shape: f32[2,256,256], index: 6, kind: output, shape index: {}]  }
   0x1   :  { %2499 = sst [smem:[#allocation23_spill]] %s2482_s0 }
   0x2   :  { %2500 = sst [smem:[#allocation24_spill]] %s2484_s2 }
   0x3   :  { %2501 = sst [smem:[#allocation25_spill]] %s2486_s4 }
   0x4   :  { %2502 = sst [smem:[#allocation26_spill]] %s2487_s5 }
   0x5   :  { %2503 = sst [smem:[#allocation27_spill]] %s2488_s6 }
   0x6   :  { %11 = vsyncpa [#allocation3], 0 }
   0x7   :  { %13 = vsyncpa [#allocation3 + $0x1], 0 }
   0x8   :  { %14 = vsyncpa [#allocation6], 0 }
   0x9   :  { %16 = vsyncpa [#allocation6 + $0x1], 0 }
   0xa   :  { %17 = vsyncpa [#allocation9], 0 }
   0xb   :  { %18 = vsyncpa [#allocation4], 0 }
   0xc   :  { %20 = vsyncpa [#allocation4 + $0x1], 0  ;;  %s1890_s21 = smov 0   ;;  %s1892_s22 = smov 0  }
   0xd   :  { %s1894_s23 = smov 0   ;;  %s1896_s24 = smov 0  }
   0xe   :  { %s1898_s25 = smov 0   ;;  %s1900_s26 = smov 0  }
   0xf   :  { %s1902_s27 = smov 0   ;;  %s1904_s28 = smov 0  }
  0x10   :  { %s1906_s29 = smov 0   ;;  %s1908_s30 = smov 0  }
  0x11   :  { %s1910_s7 = smov 0  }
  0x12 LB: > { %2504 = sst [smem:[#allocation16_spill]] %s1811_s24  ;;  %s1944_s8 = sadd.s32 4294967295, %s1839_s7   ;;  %s1839_s7 = sphi %s1910_s7, %s26_s7   ;;  %s1835_s30 = sphi %s1908_s30, %s2549_s30   ;;  %s1831_s29 = sphi %s1906_s29, %s2548_s29   ;;  %s1827_s28 = sphi %s1904_s28, %s2547_s28   ;;  %s1823_s27 = sphi %s1902_s27, %s2546_s27   ;;  %s1819_s26 = sphi %s1900_s26, %s2545_s26   ;;  %s1815_s25 = sphi %s1898_s25, %s2544_s25   ;;  %s1811_s24 = sphi %s1896_s24, %s2543_s24   ;;  %s1807_s23 = sphi %s1894_s23, %s2542_s23   ;;  %s1803_s22 = sphi %s1892_s22, %s2541_s22   ;;  %s1799_s21 = sphi %s1890_s21, %s2540_s21  }
  0x13   : > { %2505 = sst [smem:[#allocation17_spill]] %s1823_s27  ;;  %s1230_s9 = sadd.s32 4294967294, %s1839_s7  }
  0x14   : > { %2506 = sst [smem:[#allocation18_spill]] %s1827_s28  ;;  %p60_p0 = scmp.ne.s32.totalorder %s1815_s25, %s1811_s24 }
  0x15   : > { %p2489_p1 = scmp.eq.s32.totalorder %s1944_s8, 0  ;;  %p86_p2 = scmp.ne.s32.totalorder %s1803_s22, %s1799_s21 }
  0x16   : > { %p202_p5 = scmp.eq.s32.totalorder %s1230_s9, 3  ;;  %p1231_p7 = scmp.ge.s32.totalorder %s1839_s7, 1 }
  0x17   : > { %p1954_p4 = por %p2489_p1, %p60_p0  ;;  %p1960_p6 = por %p86_p2, %p2489_p1 }
  0x18   : > { %p1965_p8 = por %p202_p5, %p60_p0  ;;  %p209_p9 = scmp.lt.s32.totalorder %s1839_s7, 5 }
  0x19   : > { %s2508_s11 = scalar_select %p1960_p6, 1, 0 }
  0x1a   : > { %s2509_s12 = scalar_select %p1965_p8, 1, 0 }
  0x1b   : > { %p1970_p10 = pnand %p1231_p7, %p209_p9  ;;  %s1841_s14 = smov [#allocation7]  }
  0x1c   : > { %2510 = sst [smem:[#allocation19_spill]] %s2509_s12  ;;  %s221_s15 = sshll.u32 %s1841_s14, 4  ;;  %s222_s15 = int_to_ptr.vmem [resolvable:$true] %s221_s15 }
  0x1d   : > { %p1372_p11 = pneg %p1970_p10  ;;  %s1842_s17 = smov [#allocation8]  }
  0x1e   : > { %s237_s18 = sshll.u32 %s1842_s17, 4  ;;  %s1610_s19 = scalar_lea.vmem %s222_s15, 2048  ;;  %s238_s18 = int_to_ptr.vmem [resolvable:$true] %s237_s18 }
  0x1f   : > { %p1978_p12 = pnand %p1372_p11, %p2489_p1  ;;  %p1611_p0 = scmp.ne.s32.totalorder %s222_s15, %s1610_s19 }
  0x20   : > { %p1618_p7 = scmp.lt.s32.totalorder %s222_s15, %s222_s15  ;;  %p1619_p9 = scmp.lt.s32.totalorder %s1610_s19, %s1610_s19 }
  0x21   : > { %p1601_p13 = pneg %p1978_p12 }
  0x22   : > { %p1620_p3 = por %p1619_p9, %p1618_p7 }
  0x23   : > { %p1613_p2 = pnand %p1611_p0, %p1601_p13 }
  0x25   : > { %p1614_p5 = pneg %p1613_p2 }
  0x27   : > { %p1621_p11 = pnand %p1620_p3, %p1614_p5 }
  0x29   : > { %1624 = shalt.err (!%p1621_p11)
}
  0x2a   : > { %s1843_s20 = smov 64   ;;  %s1844_s21 = smov 4  }
  0x2b   : > { %s2513_s2 = sld [smem:[#allocation24_spill]]  ;;  %s1636_s17 = scalar_lea.vmem %s238_s18, 2048 }
  0x2c   : > { %p1637_p1 = scmp.ne.s32.totalorder %s238_s18, %s1636_s17  ;;  %p1644_p8 = scmp.lt.s32.totalorder %s238_s18, %s238_s18 }
  0x2d   : > { %p1645_p6 = scmp.lt.s32.totalorder %s1636_s17, %s1636_s17 }
  0x2e   : > { %p1639_p0 = pnand %p1637_p1, %p1601_p13 }
  0x2f   : > { %p1646_p7 = por %p1645_p6, %p1644_p8 }
  0x30   : > { %p1640_p2 = pneg %p1639_p0 }
  0x31   : > { %1375 = dma.hbm_to_vmem [thread:$0]  (!%p1978_p12), %s2513_s2, 2048, %s222_s15, [#allocation6], %s1843_s20, %s1843_s20, %s1844_s21  }
  0x32   : > { %p1647_p3 = pnand %p1646_p7, %p1640_p2 }
  0x34   : > { %1650 = shalt.err (!%p1647_p3)
}
  0x35   : > { %s1845_s19 = smov 128   ;;  %s1846_s15 = smov 8  }
  0x36   : > { %s2514_s4 = sld [smem:[#allocation25_spill]]  ;;  %s35_s9 = sadd.s32 1, %s1831_s29 }
  0x37   : > { %s38_s14 = sadd.s32 1, %s1835_s30  ;;  %p36_p1 = scmp.ge.s32.totalorder %s35_s9, 2 }
  0x38   : > { %s47_s17 = sadd.s32 1, %s1819_s26  ;;  %p54_p6 = scmp.ne.s32.totalorder %s1819_s26, %s1815_s25 }
  0x39   : > { %p55_p8 = scmp.eq.s32.totalorder %s1839_s7, 0  ;;  %s2551_s9 = smov (%p36_p1, %s35_s9), 0 }
  0x3a   : > { %2515 = sst [smem:[#allocation20_spill]] %s2551_s9  ;;  %s2553_s14 = smov (!%p36_p1, %s38_s14), %s1835_s30 }
  0x3b   : > { %s42_s2 = ssub.s32 %s1831_s29, %s2551_s9  ;;  %p2013_p13 = por %p55_p8, %p54_p6 }
  0x3c   : > { %1378 = dma.hbm_to_vmem [thread:$0]  (!%p1978_p12), %s2514_s4, 2048, %s238_s18, [#allocation9], %s1845_s19, %s1845_s19, %s1846_s15  }
  0x3d   : > { %p40_p12 = scmp.ge.s32.totalorder %s2553_s14, 2  ;;  %p2517_p5 = scmp.eq.s32.totalorder %s1944_s8, 3 }
  0x3e   : > { %p2498_p11 = scmp.lt.s32.totalorder %s1839_s7, 4  ;;  %s254_s19 = sand.u32 1, %s1819_s26  }
  0x3f   : > { %p2019_p9 = por %p2517_p5, %p54_p6  ;;  %s2555_s14 = smov (%p40_p12, %s2553_s14), 0 }
  0x40   : > { %2520 = sst [smem:[#allocation22_spill]] %s2555_s14  ;;  %s1235_s15 = sshll.u32 %s254_s19, 8 }
  0x41   : > { %s2518_s18 = scalar_select %p2019_p9, 1, 0 }
  0x42   : > { %s2029_s20 = ssub.s32 %s1835_s30, %s2555_s14  ;;  %s1290_s4 = sshll.u32 %s1835_s30, 5 }
  0x43   : > { %2519 = sst [smem:[#allocation21_spill]] %s2518_s18  ;;  %s44_s21 = sor.u32 %s2029_s20, %s42_s2 }
  0x44   : > { %p71_p0 = scmp.eq.s32.totalorder %s2029_s20, 0  ;;  %p45_p2 = scmp.eq.s32.totalorder %s44_s21, 0 }
  0x45   : > { %s1238_s9 = sshll.u32 %s1831_s29, 6  ;;  %s258_s12 = scalar_lea.vmem [#allocation2], %s1235_s15 }
  0x46   : > { %s268_s24 = sshll.u32 %s258_s12, 4  ;;  %s265_s18 = sadd.s32 %s1290_s4, %s1238_s9  ;;  %s269_s24 = int_to_ptr.vmem [resolvable:$true] %s268_s24 }
  0x47   : > { %s2036_s6 = scalar_select %p45_p2, %s1819_s26, %s47_s17  }
  0x48   : > { %s1239_s27 = sshll.u32 %s265_s18, 7  ;;  %p2042_p7 = pnand %p2498_p11, %p2013_p13 }
  0x49   : > { %s2522_s0 = sld [smem:[#allocation23_spill]]  ;;  %s255_s21 = scalar_lea.sflag [#allocation3], %s254_s19 }
  0x4a   : > { %p1653_p3 = pneg %p2042_p7  ;;  %s1664_s12 = scalar_lea.vmem %s269_s24, 4096 }
  0x4b   : > { %p1665_p1 = scmp.ne.s32.totalorder %s269_s24, %s1664_s12  ;;  %s1847_s4 = smov [#allocation2]  }
  0x4c   : > { %s1669_s9 = sshll.u32 %s1847_s4, 4  ;;  %s1670_s9 = int_to_ptr.vmem [resolvable:$false] %s1669_s9 }
  0x4d   : > { %p1667_p6 = pnand %p1665_p1, %p1653_p3  ;;  %s1671_s17 = scalar_lea.vmem %s1670_s9, 8192 }
  0x4e   : > { %p1672_p13 = scmp.lt.s32.totalorder %s269_s24, %s1670_s9  ;;  %p1673_p5 = scmp.lt.s32.totalorder %s1671_s17, %s1664_s12 }
  0x4f   : > { %s267_s2 = scalar_lea.hbm %s2522_s0, %s1239_s27  ;;  %p1668_p12 = pneg %p1667_p6 }
  0x50   : > { %p1674_p2 = por %p1673_p5, %p1672_p13 }
  0x52   : > { %p1675_p11 = pnand %p1674_p2, %p1668_p12 }
  0x54   : > { %1678 = shalt.err (!%p1675_p11)
}
  0x55   : > { %s1848_s16 = smov 256   ;;  %s1849_s5 = smov 16  }
  0x56   : > { %1382 = dma.hbm_to_vmem [thread:$0]  (!%p2042_p7), %s267_s2, 4096, %s269_s24, %s255_s21, %s1848_s16, %s1848_s16, %s1849_s5  }
  0x57   : > { %s278_s27 = sand.u32 1, %s1839_s7   ;;  %s73_s14 = sadd.s32 1, %s1807_s23 }
  0x58   : > { %p80_p11 = scmp.ne.s32.totalorder %s1807_s23, %s1803_s22  ;;  %s280_s19 = sand.u32 1, %s1807_s23  }
  0x59   : > { %s2063_s18 = scalar_select %p71_p0, %s1807_s23, %s73_s14  }
  0x5a   : > { %p82_p3 = por %p80_p11, %p55_p8  ;;  %s1240_s15 = sshll.u32 %s280_s19, 8 }
  0x5b   : > { %s1292_s12 = sshll.u32 %s1835_s30, 12  ;;  %s282_s28 = scalar_lea.vmem [#allocation5], %s1240_s15 }
  0x5c   : > { %s289_s17 = scalar_lea.hbm %s2483_s1, %s1292_s12  ;;  %s290_s0 = sshll.u32 %s282_s28, 4  ;;  %s291_s0 = int_to_ptr.vmem [resolvable:$true] %s290_s0 }
  0x5d   : > { %p2523_p1 = scmp.lt.s32.totalorder %s1839_s7, 4  ;;  %s279_s20 = scalar_lea.sflag [#allocation6], %s278_s27 }
  0x5e   : > { %s1692_s2 = scalar_lea.vmem %s291_s0, 4096  ;;  %s1850_s21 = smov [#allocation5]  }
  0x5f   : > { %p2074_p6 = pnand %p2523_p1, %p82_p3  ;;  %p1693_p8 = scmp.ne.s32.totalorder %s291_s0, %s1692_s2 }
  0x60   : > { %s1697_s14 = sshll.u32 %s1850_s21, 4  ;;  %s1698_s14 = int_to_ptr.vmem [resolvable:$false] %s1697_s14 }
  0x61   : > { %p1681_p0 = pneg %p2074_p6  ;;  %s1699_s19 = scalar_lea.vmem %s1698_s14, 8192 }
  0x62   : > { %p1700_p13 = scmp.lt.s32.totalorder %s291_s0, %s1698_s14  ;;  %p1701_p5 = scmp.lt.s32.totalorder %s1699_s19, %s1692_s2 }
  0x63   : > { %p1695_p7 = pnand %p1693_p8, %p1681_p0 }
  0x64   : > { %p1702_p2 = por %p1701_p5, %p1700_p13 }
  0x65   : > { %p1696_p12 = pneg %p1695_p7 }
  0x67   : > { %p1703_p11 = pnand %p1702_p2, %p1696_p12 }
  0x69   : > { %1706 = shalt.err (!%p1703_p11)
}
  0x6a   : > { %1385 = dma.hbm_to_vmem [thread:$0]  (!%p2074_p6), %s289_s17, 4096, %s291_s0, %s279_s20, %s1848_s16, %s1848_s16, %s1849_s5  }
  0x6b   : > { %302 = sbr.rel (%p1970_p10) target bundleno = 654 (0x28e), region = 44  ;;  %s2088_s27 = sand.u32 (!%p1970_p10), 1, %s1815_s25  }
  0x6c   : > { %s1245_s15 = sshll.u32 (!%p1970_p10), %s2088_s27, 8  ;;  %s305_s12 = scalar_lea.sflag (!%p1970_p10), [#allocation3], %s2088_s27 }
  0x6d   : > { %s2094_s4 = scalar_lea.vmem (!%p1970_p10), [#allocation2], %s1245_s15 }
  0x70   : > { %1778 = dma.done.wait (%p1954_p4), %s305_s12, 4096  }
  0x71   : > { %1780 = vsyncadd (%p1954_p4), %s305_s12, 4294963200  ;;  %s313_s0 = sand.u32 1, %s1944_s8   ;;  %s315_s13 = sand.u32 1, %s1803_s22  }
  0x72   : > { %s1246_s16 = sshll.u32 %s315_s13, 8  ;;  %s314_s5 = scalar_lea.sflag [#allocation6], %s313_s0 }
  0x73   : > { %s2102_s9 = scalar_lea.vmem [#allocation5], %s1246_s16  ;;  %p2525_p10 = scmp.ne.s32.totalorder %s2508_s11, 0 }
  0x75   : > { %1782 = dma.done.wait (%p2525_p10), %s314_s5, 4096  }
  0x76   : > { %1784 = vsyncadd (%p2525_p10), %s314_s5, 4294963200  ;;  %p2526_p3 = scmp.eq.s32.totalorder %s1944_s8, 0 }
  0x78   : > { %1786 = dma.done.wait (%p2526_p3), [#allocation6], 2048   ;;  %p2527_p1 = pmov %p2526_p3 }
  0x7a   : > { %1788 = vsyncadd (%p2527_p1), [#allocation6], 4294965248  ;;  %p2528_p4 = pmov %p2527_p1 }
  0x7b   : > { %p2529_p6 = pmov %p2527_p1 }
  0x7c   : > { %1790 = dma.done.wait (%p2528_p4), [#allocation9], 2048  }
  0x7d   : > { %1792 = vsyncadd (%p2529_p6), [#allocation9], 4294965248  ;;  %v1495_v0 = vld [vmem:[#allocation7 + $0x78] sm:$0xff]   ;;  %v1497_v2 = vld [vmem:[#allocation7 + $0x70] sm:$0xff]   ;;  %s2530_s28 = sld [smem:[#allocation26_spill]]  ;;  %s2302_s24 = scalar_lea.vmem [#allocation10], %s1245_s15 }
  0x7e   : > { %v1496_v1 = vld [vmem:[#allocation7 + $0x38] sm:$0xff]   ;;  %1294 = vmatprep.subr.bf16.mxu0 %v1495_v0  ;;  %v1498_v3 = vld [vmem:[#allocation7 + $0x30] sm:$0xff]   ;;  %v1499_v4 = vld [vmem:[#allocation7 + $0x68] sm:$0xff]   ;;  %s2531_s20 = sld [smem:[#allocation18_spill]]  ;;  %s1852_s10 = smov [#allocation10]  }
  0x7f   : > { %1295 = vmatpush3.bf16.msra.mxu0 %v1496_v1  ;;  %v1500_v5 = vld [vmem:[#allocation7 + $0x28] sm:$0xff]   ;;  %v1501_v6 = vld [vmem:[#allocation7 + $0x60] sm:$0xff]   ;;  %v1503_v8 = vld [vmem:[#allocation7 + $0x58] sm:$0xff]   ;;  %s2532_s2 = sld [smem:[#allocation17_spill]]  ;;  %s1711_s11 = sshll.u32 %s1852_s10, 4  ;;  %s1712_s11 = int_to_ptr.vmem [resolvable:$false] %s1711_s11 }
  0x80   : > { %1296 = vmatprep.subr.bf16.mxu0 %v1497_v2  ;;  %v1502_v7 = vld [vmem:[#allocation7 + $0x20] sm:$0xff]   ;;  %v1504_v9 = vld [vmem:[#allocation7 + $0x18] sm:$0xff]   ;;  %v1505_v10 = vld [vmem:[#allocation7 + $0x50] sm:$0xff]   ;;  %s2534_s16 = sld [smem:[#allocation27_spill]]  ;;  %s1713_s17 = scalar_lea.vmem %s1712_s11, 8192 }
  0x81   : > { %v2117_v11 = vld [vmem:[%s2094_s4 + $0x8] sm:$0xff]  ;;  %v2120_v12 = vld [vmem:[%s2094_s4 + $0x18] sm:$0xff]  ;;  %v1506_v14 = vld [vmem:[#allocation7 + $0x10] sm:$0xff]  }
  0x82   : > { %v396_v13 = vpack.c.bf16 %v2120_v12, %v2117_v11  ;;  %v1507_v15 = vld [vmem:[#allocation7 + $0x48] sm:$0xff]   ;;  %v1509_v17 = vld [vmem:[#allocation7 + $0x40] sm:$0xff]   ;;  %v2128_v20 = vld [vmem:[%s2094_s4 + $0x10] sm:$0xff] }
  0x83   : > { %1297 = vmatpush3.bf16.msra.mxu0 %v1498_v3  ;;  %v1508_v16 = vld [vmem:[#allocation7 + $0x8] sm:$0xff]   ;;  %v1510_v18 = vld [vmem:[#allocation7] sm:$0xff]   ;;  %v2134_v22 = vld [vmem:[%s2094_s4 + $0x38] sm:$0xff] }
  0x84   : > { %1298 = vmatprep.subr.bf16.mxu0 %v1499_v4  ;;  %578 = vmatprep.mubr.bf16.mxu0 %v396_v13  ;;  %v2125_v19 = vld [vmem:[%s2094_s4] sm:$0xff]  ;;  %v2131_v21 = vld [vmem:[%s2094_s4 + $0x28] sm:$0xff]  ;;  %v2144_v26 = vld [vmem:[%s2094_s4 + $0x30] sm:$0xff]  ;;  %s1293_s21 = sshll.u32 %s2531_s20, 5 }
  0x85   : > { %v395_v23 = vpack.c.bf16 %v2128_v20, %v2125_v19  ;;  %v398_v24 = vpack.c.bf16 %v2134_v22, %v2131_v21  ;;  %v2141_v25 = vld [vmem:[%s2094_s4 + $0x20] sm:$0xff]  ;;  %v2147_v27 = vld [vmem:[%s2094_s4 + $0x48] sm:$0xff]  ;;  %v2150_v28 = vld [vmem:[%s2094_s4 + $0x58] sm:$0xff]  ;;  %s1286_s14 = sshll.u32 %s2532_s2, 6 }
  0x86   : > { %v397_v29 = vpack.c.bf16 %v2144_v26, %v2141_v25  ;;  %v1511_v30 = vld [vmem:[#allocation8 + $0x74] ss:$8 sps:$4 sm:$0xff]   ;;  %v1513_v31 = vld [vmem:[#allocation8 + $0x70] ss:$8 sps:$4 sm:$0xff]   ;;  %v400_v32 = vpack.c.bf16 %v2150_v28, %v2147_v27  ;;  %v1514_v33 = vld [vmem:[#allocation8 + $0x64] ss:$8 sps:$4 sm:$0xff]   ;;  %s1094_s19 = sadd.s32 %s1293_s21, %s1286_s14 }
  0x87   : > { %1299 = vmatpush3.bf16.msra.mxu0 %v1500_v5  ;;  %775 = vmatprep.subr.bf16.mxu1 %v1511_v30  ;;  %v2157_v34 = vld [vmem:[%s2094_s4 + $0x40] sm:$0xff]  ;;  %v2160_v35 = vld [vmem:[%s2094_s4 + $0x50] sm:$0xff]  ;;  %v2163_v37 = vld [vmem:[%s2094_s4 + $0x68] sm:$0xff]  ;;  %s1287_s12 = sshll.u32 %s1094_s19, 7 }
  0x88   : > { %1300 = vmatprep.subr.bf16.mxu0 %v1501_v6  ;;  %776 = vmatpush1.bf16.msra.mxu1 %v1513_v31  ;;  %v1516_v36 = vld [vmem:[#allocation8 + $0x60] ss:$8 sps:$4 sm:$0xff]   ;;  %v1517_v38 = vld [vmem:[#allocation8 + $0x54] ss:$8 sps:$4 sm:$0xff]   ;;  %v1519_v40 = vld [vmem:[#allocation8 + $0x50] ss:$8 sps:$4 sm:$0xff]   ;;  %v399_v41 = vpack.c.bf16 %v2160_v35, %v2157_v34  ;;  %s2416_s5 = scalar_lea.hbm %s2534_s16, %s1287_s12 }
  0x89   : > { %777 = vmatprep.subr.bf16.mxu1 %v1514_v33  ;;  %v2166_v39 = vld [vmem:[%s2094_s4 + $0x78] sm:$0xff]  ;;  %v1520_v42 = vld [vmem:[#allocation8 + $0x44] ss:$8 sps:$4 sm:$0xff]   ;;  %v1522_v44 = vld [vmem:[#allocation8 + $0x40] ss:$8 sps:$4 sm:$0xff]  }
  0x8a   : > { %v402_v43 = vpack.c.bf16 %v2166_v39, %v2163_v37  ;;  %v1523_v45 = vld [vmem:[#allocation8 + $0x34] ss:$8 sps:$4 sm:$0xff]   ;;  %v2173_v46 = vld [vmem:[%s2094_s4 + $0x60] sm:$0xff]  ;;  %v2179_v48 = vld [vmem:[%s2094_s4 + $0x88] sm:$0xff] }
  0x8b   : > { %1301 = vmatpush3.bf16.msra.mxu0 %v1502_v7  ;;  %v2176_v47 = vld [vmem:[%s2094_s4 + $0x70] sm:$0xff]  ;;  %v2182_v49 = vld [vmem:[%s2094_s4 + $0x98] sm:$0xff]  ;;  %v2189_v52 = vld [vmem:[%s2094_s4 + $0x80] sm:$0xff] }
  0x8c   : > { %1302 = vmatprep.subr.bf16.mxu0 %v1503_v8  ;;  %778 = vmatpush1.bf16.msra.mxu1 %v1516_v36  ;;  %v401_v50 = vpack.c.bf16 %v2176_v47, %v2173_v46  ;;  %v404_v51 = vpack.c.bf16 %v2182_v49, %v2179_v48  ;;  %v2192_v53 = vld [vmem:[%s2094_s4 + $0x90] sm:$0xff]  ;;  %v2195_v54 = vld [vmem:[%s2094_s4 + $0xa8] sm:$0xff]  ;;  %v2198_v55 = vld [vmem:[%s2094_s4 + $0xb8] sm:$0xff] }
  0x8d   : > { %779 = vmatprep.subr.bf16.mxu1 %v1517_v38  ;;  %v403_v56 = vpack.c.bf16 %v2192_v53, %v2189_v52  ;;  %v406_v57 = vpack.c.bf16 %v2198_v55, %v2195_v54  ;;  %v2205_v58 = vld [vmem:[%s2094_s4 + $0xa0] sm:$0xff]  ;;  %v2208_v59 = vld [vmem:[%s2094_s4 + $0xb0] sm:$0xff]  ;;  %v2211_v60 = vld [vmem:[%s2094_s4 + $0xc8] sm:$0xff] }
  0x8e   : > { %v2214_v61 = vld [vmem:[%s2094_s4 + $0xd8] sm:$0xff]  ;;  %v405_v62 = vpack.c.bf16 %v2208_v59, %v2205_v58  ;;  %v2221_v0 = vld [vmem:[%s2094_s4 + $0xc0] sm:$0xff]  ;;  %v2224_v1 = vld [vmem:[%s2094_s4 + $0xd0] sm:$0xff] }
  0x8f   : > { %1303 = vmatpush3.bf16.msra.mxu0 %v1504_v9  ;;  %v408_v63 = vpack.c.bf16 %v2214_v61, %v2211_v60  ;;  %v2227_v2 = vld [vmem:[%s2094_s4 + $0xe8] sm:$0xff]  ;;  %v2230_v3 = vld [vmem:[%s2094_s4 + $0xf8] sm:$0xff]  ;;  %v407_v4 = vpack.c.bf16 %v2224_v1, %v2221_v0  ;;  %v2237_v6 = vld [vmem:[%s2094_s4 + $0xe0] sm:$0xff] }
  0x90   : > { %1304 = vmatprep.subr.bf16.mxu0 %v1505_v10  ;;  %780 = vmatpush1.bf16.msra.mxu1 %v1519_v40  ;;  %v410_v5 = vpack.c.bf16 %v2230_v3, %v2227_v2  ;;  %v2240_v7 = vld [vmem:[%s2094_s4 + $0xf0] sm:$0xff]  ;;  %v1526_v10 = vld [vmem:[#allocation8 + $0x24] ss:$8 sps:$4 sm:$0xff]   ;;  %v1528_v13 = vld [vmem:[#allocation8 + $0x20] ss:$8 sps:$4 sm:$0xff]   ;;  %s1097_s4 = sshll.u32 %s2302_s24, 4  ;;  %s2418_s4 = int_to_ptr.vmem [resolvable:$true] %s1097_s4 }
  0x91   : > { %781 = vmatprep.subr.bf16.mxu1 %v1520_v42  ;;  %v409_v8 = vpack.c.bf16 %v2240_v7, %v2237_v6  ;;  %v1525_v9 = vld [vmem:[#allocation8 + $0x30] ss:$8 sps:$4 sm:$0xff]   ;;  %v2248_v30 = vld [vmem:[%s2485_s3] ss:$0 sm:$0xff]  ;;  %s1707_s8 = scalar_lea.vmem %s2418_s4, 4096  ;;  %p1714_p12 = scmp.lt.s32.totalorder %s2418_s4, %s1712_s11 }
  0x92   : > { %p1708_p0 = scmp.ne.s32.totalorder %s2418_s4, %s1707_s8  ;;  %p1715_p13 = scmp.lt.s32.totalorder %s1713_s17, %s1707_s8 }
  0x93   : > { %1305 = vmatpush3.bf16.msra.mxu0 %v1506_v14  ;;  %v1529_v14 = vld [vmem:[#allocation8 + $0x14] ss:$8 sps:$4 sm:$0xff]  }
  0x94   : > { %1306 = vmatprep.subr.bf16.mxu0 %v1507_v15  ;;  %782 = vmatpush1.bf16.msra.mxu1 %v1522_v44  ;;  %v1531_v15 = vld [vmem:[#allocation8 + $0x10] ss:$8 sps:$4 sm:$0xff]   ;;  %p1709_p8 = pnand %p1708_p0, %p2019_p9  ;;  %p1716_p5 = por %p1715_p13, %p1714_p12 }
  0x95   : > { %783 = vmatprep.subr.bf16.mxu1 %v1523_v45 }
  0x96   : > { %p1710_p7 = pneg %p1709_p8 }
  0x97   : > { %1307 = vmatpush3.bf16.msra.mxu0 %v1508_v16  ;;  %v1532_v16 = vld [vmem:[#allocation8 + $0x4] ss:$8 sps:$4 sm:$0xff]  }
  0x98   : > { %1308 = vmatprep.subr.bf16.mxu0 %v1509_v17  ;;  %784 = vmatpush1.bf16.msra.mxu1 %v1525_v9  ;;  %v1534_v17 = vld [vmem:[#allocation8] ss:$8 sps:$4 sm:$0xff]   ;;  %p1717_p2 = pnand %p1716_p5, %p1710_p7 }
  0x99   : > { %785 = vmatprep.subr.bf16.mxu1 %v1526_v10 }
  0x9b   : > { %1309 = vmatpush3.bf16.msra.mxu0 %v1510_v18  ;;  %v1851_v18 = vmov 0  }
  0x9c   : > { %786 = vmatpush1.bf16.msra.mxu1 %v1528_v13  ;;  %807 = vmatprep.mubr.bf16.mxu1 %v1851_v18 }
  0x9d   : > { %787 = vmatprep.subr.bf16.mxu1 %v1529_v14 }
  0x9e   : > { %579 = vmatmul.mubr.bf16.vlgmr.msra.gmra.mxu0 %v395_v23 }
  0x9f   : > { %586 = vmatprep.mubr.bf16.mxu0 %v398_v24 }
  0xa0   : > { %788 = vmatpush1.bf16.msra.mxu1 %v1531_v15 }
  0xa1   : > { %789 = vmatprep.subr.bf16.mxu1 %v1532_v16 }
  0xa4   : > { %790 = vmatpush1.bf16.msra.mxu1 %v1534_v17 }
  0xa6   : > { %587 = vmatmul.mubr.bf16.gmra.mxu0 %v397_v29 }
  0xa7   : > { %594 = vmatprep.mubr.bf16.mxu0 %v400_v32 }
  0xae   : > { %595 = vmatmul.mubr.bf16.gmra.mxu0 %v399_v41 }
  0xaf   : > { %602 = vmatprep.mubr.bf16.mxu0 %v402_v43 }
  0xb6   : > { %603 = vmatmul.mubr.bf16.gmra.mxu0 %v401_v50 }
  0xb7   : > { %610 = vmatprep.mubr.bf16.mxu0 %v404_v51 }
  0xbe   : > { %611 = vmatmul.mubr.bf16.gmra.mxu0 %v403_v56 }
  0xbf   : > { %618 = vmatprep.mubr.bf16.mxu0 %v406_v57 }
  0xc6   : > { %619 = vmatmul.mubr.bf16.gmra.mxu0 %v405_v62 }
  0xc7   : > { %626 = vmatprep.mubr.bf16.mxu0 %v408_v63 }
  0xce   : > { %627 = vmatmul.mubr.bf16.gmra.mxu0 %v407_v4 }
  0xcf   : > { %634 = vmatprep.mubr.bf16.mxu0 %v410_v5 }
  0xd6   : > { %635 = vmatmul.mubr.bf16.gmra.mxu0 %v409_v8 }
 0x15e   : > { %v1310_v23 = vpop.f32.mrf.mxu0 }
 0x160   : > { %v1311_v24 = vpop.f32.mrf.mxu0 }
 0x161   : > { %v1312_v29 = vadd.f32 %v1311_v24, %v1310_v23 }
 0x162   : > { %v1313_v31 = vpop.f32.mrf.mxu0 }
 0x163   : > { %v581_v33 = vadd.f32 %v1312_v29, %v2248_v30 }
 0x164   : > { %v1314_v32 = vpop.f32.mrf.mxu0 }
 0x165   : > { %v1315_v36 = vadd.f32 %v1314_v32, %v1313_v31  ;;  %v643_v42 = vmax.f32 %v581_v33, 0.0 }
 0x166   : > { %v1316_v38 = vpop.f32.mrf.mxu0 }
 0x167   : > { %v584_v40 = vadd.f32 %v1315_v36, %v2248_v30 }
 0x168   : > { %v1317_v41 = vpop.f32.mrf.mxu0 }
 0x169   : > { %v644_v43 = vmax.f32 %v584_v40, 0.0  ;;  %v1318_v44 = vadd.f32 %v1317_v41, %v1316_v38 }
 0x16a   : > { %v1319_v45 = vpop.f32.mrf.mxu0 }
 0x16b   : > { %v659_v50 = vpack.c.bf16 %v644_v43, %v643_v42  ;;  %v589_v56 = vadd.f32 %v1318_v44, %v2248_v30 }
 0x16c   : > { %v1320_v51 = vpop.f32.mrf.mxu0 }
 0x16d   : > { %v1321_v57 = vadd.f32 %v1320_v51, %v1319_v45  ;;  %808 = vmatmul.mubr.bf16.vlgmr.msra.gmra.mxu1 %v659_v50  ;;  %v645_v5 = vmax.f32 %v589_v56, 0.0 }
 0x16e   : > { %v1322_v62 = vpop.f32.mrf.mxu0  ;;  %817 = vmatprep.mubr.bf16.mxu1 %v1851_v18 }
 0x16f   : > { %v592_v63 = vadd.f32 %v1321_v57, %v2248_v30 }
 0x170   : > { %v1323_v4 = vpop.f32.mrf.mxu0 }
 0x171   : > { %v646_v8 = vmax.f32 %v592_v63, 0.0  ;;  %v1324_v9 = vadd.f32 %v1323_v4, %v1322_v62 }
 0x172   : > { %v1325_v10 = vpop.f32.mrf.mxu0 }
 0x173   : > { %v660_v13 = vpack.c.bf16 %v646_v8, %v645_v5  ;;  %v597_v15 = vadd.f32 %v1324_v9, %v2248_v30 }
 0x174   : > { %v1326_v14 = vpop.f32.mrf.mxu0 }
 0x175   : > { %v1327_v16 = vadd.f32 %v1326_v14, %v1325_v10  ;;  %818 = vmatmul.mubr.bf16.gmra.mxu1 %v660_v13  ;;  %v647_v29 = vmax.f32 %v597_v15, 0.0 }
 0x176   : > { %v1328_v17 = vpop.f32.mrf.mxu0  ;;  %827 = vmatprep.mubr.bf16.mxu1 %v1851_v18 }
 0x177   : > { %v600_v23 = vadd.f32 %v1327_v16, %v2248_v30 }
 0x178   : > { %v1329_v24 = vpop.f32.mrf.mxu0 }
 0x179   : > { %v648_v31 = vmax.f32 %v600_v23, 0.0  ;;  %v1330_v32 = vadd.f32 %v1329_v24, %v1328_v17 }
 0x17a   : > { %v1331_v33 = vpop.f32.mrf.mxu0 }
 0x17b   : > { %v661_v36 = vpack.c.bf16 %v648_v31, %v647_v29  ;;  %v605_v40 = vadd.f32 %v1330_v32, %v2248_v30 }
 0x17c   : > { %v1332_v38 = vpop.f32.mrf.mxu0 }
 0x17d   : > { %v1333_v41 = vadd.f32 %v1332_v38, %v1331_v33  ;;  %828 = vmatmul.mubr.bf16.gmra.mxu1 %v661_v36  ;;  %v649_v45 = vmax.f32 %v605_v40, 0.0 }
 0x17e   : > { %v1334_v42 = vpop.f32.mrf.mxu0  ;;  %837 = vmatprep.mubr.bf16.mxu1 %v1851_v18 }
 0x17f   : > { %v608_v43 = vadd.f32 %v1333_v41, %v2248_v30 }
 0x180   : > { %v1335_v44 = vpop.f32.mrf.mxu0 }
 0x181   : > { %v650_v50 = vmax.f32 %v608_v43, 0.0  ;;  %v1336_v51 = vadd.f32 %v1335_v44, %v1334_v42 }
 0x182   : > { %v1337_v56 = vpop.f32.mrf.mxu0 }
 0x183   : > { %v662_v57 = vpack.c.bf16 %v650_v50, %v649_v45  ;;  %v613_v63 = vadd.f32 %v1336_v51, %v2248_v30 }
 0x184   : > { %v1338_v62 = vpop.f32.mrf.mxu0 }
 0x185   : > { %v1339_v4 = vadd.f32 %v1338_v62, %v1337_v56  ;;  %838 = vmatmul.mubr.bf16.gmra.mxu1 %v662_v57  ;;  %v651_v10 = vmax.f32 %v613_v63, 0.0 }
 0x186   : > { %v1340_v5 = vpop.f32.mrf.mxu0  ;;  %847 = vmatprep.mubr.bf16.mxu1 %v1851_v18 }
 0x187   : > { %v616_v8 = vadd.f32 %v1339_v4, %v2248_v30 }
 0x188   : > { %v1341_v9 = vpop.f32.mrf.mxu0 }
 0x189   : > { %v652_v13 = vmax.f32 %v616_v8, 0.0  ;;  %v1342_v14 = vadd.f32 %v1341_v9, %v1340_v5 }
 0x18a   : > { %v1343_v15 = vpop.f32.mrf.mxu0 }
 0x18b   : > { %v663_v16 = vpack.c.bf16 %v652_v13, %v651_v10  ;;  %v621_v23 = vadd.f32 %v1342_v14, %v2248_v30 }
 0x18c   : > { %v1344_v17 = vpop.f32.mrf.mxu0 }
 0x18d   : > { %v1345_v24 = vadd.f32 %v1344_v17, %v1343_v15  ;;  %848 = vmatmul.mubr.bf16.gmra.mxu1 %v663_v16  ;;  %v653_v33 = vmax.f32 %v621_v23, 0.0  ;;  %v685_v16 = vlaneseq }
 0x18e   : > { %v1346_v29 = vpop.f32.mrf.mxu0  ;;  %857 = vmatprep.mubr.bf16.mxu1 %v1851_v18 }
 0x18f   : > { %v624_v31 = vadd.f32 %v1345_v24, %v2248_v30  ;;  %v686_v17 = vshrl.u32 %v685_v16, 7  ;;  %v683_v24 = vld [vmem:[%s2530_s28] sm:$0x3] }
 0x190   : > { %v1347_v32 = vpop.f32.mrf.mxu0 }
 0x191   : > { %v654_v36 = vmax.f32 %v624_v31, 0.0  ;;  %v1348_v38 = vadd.f32 %v1347_v32, %v1346_v29  ;;  %v687_v23 = vsub.s32 0, %v686_v17  ;;  %v691_v29 = vsub.s32 1, %v686_v17 }
 0x192   : > { %v1349_v40 = vpop.f32.mrf.mxu0 }
 0x193   : > { %v664_v41 = vpack.c.bf16 %v654_v36, %v653_v33  ;;  %v629_v43 = vadd.f32 %v1348_v38, %v2248_v30  ;;  %v2276_v31 = vrot.slane %v683_v24, %v687_v23  ;;  %v2278_v32 = vrot.slane %v683_v24, %v691_v29  ;;  %v956_v29 = vld [vmem:[%s2102_s9 + $0x20] sm:$0xff] }
 0x194   : > { %v1350_v42 = vpop.f32.mrf.mxu0 }
 0x195   : > { %v1351_v44 = vadd.f32 %v1350_v42, %v1349_v40  ;;  %858 = vmatmul.mubr.bf16.gmra.mxu1 %v664_v41  ;;  %v655_v56 = vmax.f32 %v629_v43, 0.0 }
 0x196   : > { %v1352_v45 = vpop.f32.mrf.mxu0  ;;  %867 = vmatprep.mubr.bf16.mxu1 %v1851_v18 }
 0x197   : > { %v632_v50 = vadd.f32 %v1351_v44, %v2248_v30 }
 0x198   : > { %v1353_v51 = vpop.f32.mrf.mxu0 }
 0x199   : > { %v656_v57 = vmax.f32 %v632_v50, 0.0  ;;  %v1354_v62 = vadd.f32 %v1353_v51, %v1352_v45  ;;  %v952_v51 = vld [vmem:[%s2102_s9] sm:$0xff] }
 0x19a   : > { %v1355_v63 = vpop.f32.mrf.mxu0 }
 0x19b   : > { %v665_v4 = vpack.c.bf16 %v656_v57, %v655_v56  ;;  %v637_v8 = vadd.f32 %v1354_v62, %v2248_v30  ;;  %v953_v62 = vld [vmem:[%s2102_s9 + $0x8] sm:$0xff] }
 0x19c   : > { %v1356_v5 = vpop.f32.mrf.mxu0 }
 0x19d   : > { %v1357_v9 = vadd.f32 %v1356_v5, %v1355_v63  ;;  %868 = vmatmul.mubr.bf16.gmra.mxu1 %v665_v4  ;;  %v657_v13 = vmax.f32 %v637_v8, 0.0  ;;  %v954_v4 = vld [vmem:[%s2102_s9 + $0x10] sm:$0xff]  ;;  %v984_v5 = vadd.f32 %v952_v51, %v2125_v19 }
 0x19e   : > { %877 = vmatprep.mubr.bf16.mxu1 %v1851_v18  ;;  %v986_v23 = vadd.f32 %v954_v4, %v2128_v20 }
 0x19f   : > { %v640_v10 = vadd.f32 %v1357_v9, %v2248_v30 }
 0x1a1   : > { %v658_v14 = vmax.f32 %v640_v10, 0.0 }
 0x1a3   : > { %v666_v15 = vpack.c.bf16 %v658_v14, %v657_v13  ;;  %v955_v13 = vld [vmem:[%s2102_s9 + $0x18] sm:$0xff]  ;;  %v985_v14 = vadd.f32 %v953_v62, %v2117_v11 }
 0x1a5   : > { %878 = vmatmul.mubr.bf16.gmra.mxu1 %v666_v15 }
 0x22d   : > { %v809_v33 = vpop.f32.mrf.mxu1 }
 0x22e   : > { %v810_v18 = vadd.f32 %v809_v33, %v2276_v31 }
 0x22f   : > { %v811_v30 = vpop.f32.mrf.mxu1 }
 0x230   : > { %1535 = vtanh.f32 %v810_v18  ;;  %v812_v36 = vadd.f32 %v811_v30, %v2278_v32 }
 0x231   : > { %v813_v38 = vpop.f32.mrf.mxu1 }
 0x232   : > { %1537 = vtanh.f32 %v812_v36  ;;  %v814_v40 = vadd.f32 %v813_v38, %v2276_v31  ;;  %v987_v36 = vadd.f32 %v955_v13, %v2120_v12  ;;  %v957_v38 = vld [vmem:[%s2102_s9 + $0x28] sm:$0xff]  ;;  %v958_v12 = vld [vmem:[%s2102_s9 + $0x30] sm:$0xff]  ;;  %v960_v13 = vld [vmem:[%s2102_s9 + $0x40] sm:$0xff] }
 0x233   : > { %v815_v41 = vpop.f32.mrf.mxu1 }
 0x234   : > { %1539 = vtanh.f32 %v814_v40  ;;  %v816_v42 = vadd.f32 %v815_v41, %v2278_v32 }
 0x235   : > { %v819_v43 = vpop.f32.mrf.mxu1 }
 0x236   : > { %1541 = vtanh.f32 %v816_v42  ;;  %v820_v44 = vadd.f32 %v819_v43, %v2276_v31  ;;  %v988_v43 = vadd.f32 %v956_v29, %v2141_v25 }
 0x237   : > { %v821_v45 = vpop.f32.mrf.mxu1 }
 0x238   : > { %1543 = vtanh.f32 %v820_v44  ;;  %v822_v50 = vadd.f32 %v821_v45, %v2278_v32 }
 0x239   : > { %v823_v56 = vpop.f32.mrf.mxu1 }
 0x23a   : > { %1545 = vtanh.f32 %v822_v50  ;;  %v824_v57 = vadd.f32 %v823_v56, %v2276_v31 }
 0x23b   : > { %v825_v63 = vpop.f32.mrf.mxu1 }
 0x23c   : > { %1547 = vtanh.f32 %v824_v57  ;;  %v826_v8 = vadd.f32 %v825_v63, %v2278_v32  ;;  %v989_v57 = vadd.f32 %v957_v38, %v2131_v21  ;;  %v959_v63 = vld [vmem:[%s2102_s9 + $0x38] sm:$0xff] }
 0x23d   : > { %v1536_v9 = vpop.eup %1535  ;;  %v829_v10 = vpop.f32.mrf.mxu1 }
 0x23e   : > { %v920_v15 = vmul.f32 0.1, %v1536_v9  ;;  %1549 = vtanh.f32 %v826_v8  ;;  %v830_v16 = vadd.f32 %v829_v10, %v2276_v31  ;;  %v990_v9 = vadd.f32 %v958_v12, %v2144_v26 }
 0x23f   : > { %v1538_v17 = vpop.eup %1537  ;;  %v831_v24 = vpop.f32.mrf.mxu1 }
 0x240   : > { %v1016_v19 = vadd.f32 %v984_v5, %v920_v15  ;;  %v921_v33 = vmul.f32 0.1, %v1538_v17  ;;  %1551 = vtanh.f32 %v830_v16  ;;  %v832_v18 = vadd.f32 %v831_v24, %v2278_v32  ;;  %v961_v24 = vld [vmem:[%s2102_s9 + $0x48] sm:$0xff] }
 0x241   : > { %v1540_v30 = vpop.eup %1539  ;;  %v833_v11 = vpop.f32.mrf.mxu1  ;;  %v991_v17 = vadd.f32 %v959_v63, %v2134_v22 }
 0x242   : > { %1048 = vst [vmem:[%s2302_s24] sm:$0xff] %v1016_v19  ;;  %v1017_v20 = vadd.f32 %v985_v14, %v921_v33  ;;  %v922_v40 = vmul.f32 0.1, %v1540_v30  ;;  %1553 = vtanh.f32 %v832_v18  ;;  %v834_v41 = vadd.f32 %v833_v11, %v2276_v31 }
 0x243   : > { %v1542_v42 = vpop.eup %1541  ;;  %v835_v44 = vpop.f32.mrf.mxu1  ;;  %v992_v18 = vadd.f32 %v960_v13, %v2157_v34 }
 0x244   : > { %1049 = vst [vmem:[%s2302_s24 + $0x8] sm:$0xff] %v1017_v20  ;;  %v1018_v45 = vadd.f32 %v986_v23, %v922_v40  ;;  %v923_v50 = vmul.f32 0.1, %v1542_v42  ;;  %1555 = vtanh.f32 %v834_v41  ;;  %v836_v51 = vadd.f32 %v835_v44, %v2278_v32  ;;  %v963_v42 = vld [vmem:[%s2102_s9 + $0x58] sm:$0xff] }
 0x245   : > { %v1544_v56 = vpop.eup %1543  ;;  %v839_v62 = vpop.f32.mrf.mxu1  ;;  %v993_v40 = vadd.f32 %v961_v24, %v2147_v27  ;;  %v995_v63 = vadd.f32 %v963_v42, %v2150_v28  ;;  %v967_v24 = vld [vmem:[%s2102_s9 + $0x78] sm:$0xff] }
 0x246   : > { %1050 = vst [vmem:[%s2302_s24 + $0x10] sm:$0xff] %v1018_v45  ;;  %v1019_v4 = vadd.f32 %v987_v36, %v923_v50  ;;  %v924_v5 = vmul.f32 0.1, %v1544_v56  ;;  %1557 = vtanh.f32 %v836_v51  ;;  %v840_v25 = vadd.f32 %v839_v62, %v2276_v31  ;;  %v962_v36 = vld [vmem:[%s2102_s9 + $0x50] sm:$0xff]  ;;  %v964_v51 = vld [vmem:[%s2102_s9 + $0x60] sm:$0xff] }
 0x247   : > { %v1546_v8 = vpop.eup %1545  ;;  %v841_v10 = vpop.f32.mrf.mxu1  ;;  %v994_v45 = vadd.f32 %v962_v36, %v2160_v35 }
 0x248   : > { %1051 = vst [vmem:[%s2302_s24 + $0x18] sm:$0xff] %v1019_v4  ;;  %v1020_v14 = vadd.f32 %v988_v43, %v924_v5  ;;  %v925_v15 = vmul.f32 0.1, %v1546_v8  ;;  %1559 = vtanh.f32 %v840_v25  ;;  %v842_v21 = vadd.f32 %v841_v10, %v2278_v32  ;;  %v965_v5 = vld [vmem:[%s2102_s9 + $0x68] sm:$0xff] }
 0x249   : > { %v1548_v16 = vpop.eup %1547  ;;  %v843_v23 = vpop.f32.mrf.mxu1  ;;  %v996_v10 = vadd.f32 %v964_v51, %v2173_v46 }
 0x24a   : > { %1052 = vst [vmem:[%s2302_s24 + $0x20] sm:$0xff] %v1020_v14  ;;  %v1021_v29 = vadd.f32 %v989_v57, %v925_v15  ;;  %v926_v19 = vmul.f32 0.1, %v1548_v16  ;;  %1561 = vtanh.f32 %v842_v21  ;;  %v844_v26 = vadd.f32 %v843_v23, %v2276_v31  ;;  %v966_v14 = vld [vmem:[%s2102_s9 + $0x70] sm:$0xff] }
 0x24b   : > { %v1550_v33 = vpop.eup %1549  ;;  %v845_v30 = vpop.f32.mrf.mxu1 }
 0x24c   : > { %1053 = vst [vmem:[%s2302_s24 + $0x28] sm:$0xff] %v1021_v29  ;;  %v1022_v11 = vadd.f32 %v990_v9, %v926_v19  ;;  %v927_v38 = vmul.f32 0.1, %v1550_v33  ;;  %1563 = vtanh.f32 %v844_v26  ;;  %v846_v22 = vadd.f32 %v845_v30, %v2278_v32  ;;  %v968_v30 = vld [vmem:[%s2102_s9 + $0x80] sm:$0xff] }
 0x24d   : > { %v1552_v20 = vpop.eup %1551  ;;  %v849_v41 = vpop.f32.mrf.mxu1  ;;  %v998_v33 = vadd.f32 %v966_v14, %v2176_v47 }
 0x24e   : > { %1054 = vst [vmem:[%s2302_s24 + $0x30] sm:$0xff] %v1022_v11  ;;  %v1023_v43 = vadd.f32 %v991_v17, %v927_v38  ;;  %v928_v44 = vmul.f32 0.1, %v1552_v20  ;;  %1565 = vtanh.f32 %v846_v22  ;;  %v850_v34 = vadd.f32 %v849_v41, %v2276_v31 }
 0x24f   : > { %v1554_v12 = vpop.eup %1553  ;;  %v851_v50 = vpop.f32.mrf.mxu1  ;;  %v997_v17 = vadd.f32 %v965_v5, %v2163_v37  ;;  %v999_v22 = vadd.f32 %v967_v24, %v2166_v39  ;;  %v974_v24 = vld [vmem:[%s2102_s9 + $0xb0] sm:$0xff] }
 0x250   : > { %1055 = vst [vmem:[%s2302_s24 + $0x38] sm:$0xff] %v1023_v43  ;;  %v1024_v56 = vadd.f32 %v992_v18, %v928_v44  ;;  %v929_v57 = vmul.f32 0.1, %v1554_v12  ;;  %1567 = vtanh.f32 %v850_v34  ;;  %v852_v27 = vadd.f32 %v851_v50, %v2278_v32  ;;  %v970_v12 = vld [vmem:[%s2102_s9 + $0x90] sm:$0xff] }
 0x251   : > { %v1556_v62 = vpop.eup %1555  ;;  %v853_v4 = vpop.f32.mrf.mxu1  ;;  %v1000_v44 = vadd.f32 %v968_v30, %v2189_v52  ;;  %v1002_v5 = vadd.f32 %v970_v12, %v2192_v53  ;;  %v977_v12 = vld [vmem:[%s2102_s9 + $0xc8] sm:$0xff] }
 0x252   : > { %1056 = vst [vmem:[%s2302_s24 + $0x40] sm:$0xff] %v1024_v56  ;;  %v1025_v25 = vadd.f32 %v993_v40, %v929_v57  ;;  %v930_v8 = vmul.f32 0.1, %v1556_v62  ;;  %1569 = vtanh.f32 %v852_v27  ;;  %v854_v35 = vadd.f32 %v853_v4, %v2276_v31  ;;  %v969_v40 = vld [vmem:[%s2102_s9 + $0x88] sm:$0xff]  ;;  %v971_v27 = vld [vmem:[%s2102_s9 + $0x98] sm:$0xff] }
 0x253   : > { %v1558_v9 = vpop.eup %1557  ;;  %v855_v13 = vpop.f32.mrf.mxu1  ;;  %v1001_v56 = vadd.f32 %v969_v40, %v2179_v48 }
 0x254   : > { %1057 = vst [vmem:[%s2302_s24 + $0x48] sm:$0xff] %v1025_v25  ;;  %v1026_v15 = vadd.f32 %v994_v45, %v930_v8  ;;  %v931_v21 = vmul.f32 0.1, %v1558_v9  ;;  %1571 = vtanh.f32 %v854_v35  ;;  %v856_v28 = vadd.f32 %v855_v13, %v2278_v32  ;;  %v972_v8 = vld [vmem:[%s2102_s9 + $0xa0] sm:$0xff] }
 0x255   : > { %v1560_v16 = vpop.eup %1559  ;;  %v859_v23 = vpop.f32.mrf.mxu1  ;;  %v1003_v13 = vadd.f32 %v971_v27, %v2182_v49  ;;  %v1009_v27 = vadd.f32 %v977_v12, %v2211_v60 }
 0x256   : > { %1058 = vst [vmem:[%s2302_s24 + $0x50] sm:$0xff] %v1026_v15  ;;  %v1027_v29 = vadd.f32 %v995_v63, %v931_v21  ;;  %v932_v19 = vmul.f32 0.1, %v1560_v16  ;;  %1573 = vtanh.f32 %v856_v28  ;;  %v860_v46 = vadd.f32 %v859_v23, %v2276_v31  ;;  %v973_v15 = vld [vmem:[%s2102_s9 + $0xa8] sm:$0xff] }
 0x257   : > { %v1562_v26 = vpop.eup %1561  ;;  %v861_v18 = vpop.f32.mrf.mxu1 }
 0x258   : > { %1059 = vst [vmem:[%s2302_s24 + $0x58] sm:$0xff] %v1027_v29  ;;  %v1028_v36 = vadd.f32 %v996_v10, %v932_v19  ;;  %v933_v11 = vmul.f32 0.1, %v1562_v26  ;;  %1575 = vtanh.f32 %v860_v46  ;;  %v862_v37 = vadd.f32 %v861_v18, %v2278_v32  ;;  %v975_v18 = vld [vmem:[%s2102_s9 + $0xb8] sm:$0xff] }
 0x259   : > { %v1564_v38 = vpop.eup %1563  ;;  %v863_v20 = vpop.f32.mrf.mxu1  ;;  %v1005_v26 = vadd.f32 %v973_v15, %v2195_v54  ;;  %v982_v15 = vld [vmem:[%s2102_s9 + $0xf0] sm:$0xff] }
 0x25a   : > { %1060 = vst [vmem:[%s2302_s24 + $0x60] sm:$0xff] %v1028_v36  ;;  %v1029_v41 = vadd.f32 %v997_v17, %v933_v11  ;;  %v934_v42 = vmul.f32 0.1, %v1564_v38  ;;  %1577 = vtanh.f32 %v862_v37  ;;  %v864_v47 = vadd.f32 %v863_v20, %v2276_v31 }
 0x25b   : > { %v1566_v43 = vpop.eup %1565  ;;  %v865_v34 = vpop.f32.mrf.mxu1  ;;  %v1004_v17 = vadd.f32 %v972_v8, %v2205_v58  ;;  %v1006_v37 = vadd.f32 %v974_v24, %v2208_v59 }
 0x25c   : > { %1061 = vst [vmem:[%s2302_s24 + $0x68] sm:$0xff] %v1029_v41  ;;  %v1030_v45 = vadd.f32 %v998_v33, %v934_v42  ;;  %v935_v50 = vmul.f32 0.1, %v1566_v43  ;;  %1579 = vtanh.f32 %v864_v47  ;;  %v866_v39 = vadd.f32 %v865_v34, %v2278_v32 }
 0x25d   : > { %v1568_v51 = vpop.eup %1567  ;;  %v869_v57 = vpop.f32.mrf.mxu1  ;;  %v1007_v42 = vadd.f32 %v975_v18, %v2198_v55 }
 0x25e   : > { %1062 = vst [vmem:[%s2302_s24 + $0x70] sm:$0xff] %v1030_v45  ;;  %v1031_v62 = vadd.f32 %v999_v22, %v935_v50  ;;  %v936_v63 = vmul.f32 0.1, %v1568_v51  ;;  %1581 = vtanh.f32 %v866_v39  ;;  %v870_v52 = vadd.f32 %v869_v57, %v2276_v31  ;;  %v976_v22 = vld [vmem:[%s2102_s9 + $0xc0] sm:$0xff]  ;;  %v978_v57 = vld [vmem:[%s2102_s9 + $0xd0] sm:$0xff] }
 0x25f   : > { %v1570_v4 = vpop.eup %1569  ;;  %v871_v25 = vpop.f32.mrf.mxu1  ;;  %v1008_v45 = vadd.f32 %v976_v22, %v2221_v0 }
 0x260   : > { %1063 = vst [vmem:[%s2302_s24 + $0x78] sm:$0xff] %v1031_v62  ;;  %v1032_v35 = vadd.f32 %v1000_v44, %v936_v63  ;;  %v937_v9 = vmul.f32 0.1, %v1570_v4  ;;  %1583 = vtanh.f32 %v870_v52  ;;  %v872_v48 = vadd.f32 %v871_v25, %v2278_v32  ;;  %v979_v63 = vld [vmem:[%s2102_s9 + $0xd8] sm:$0xff]  ;;  %v980_v25 = vld [vmem:[%s2102_s9 + $0xe0] sm:$0xff] }
 0x261   : > { %v1572_v10 = vpop.eup %1571  ;;  %v873_v14 = vpop.f32.mrf.mxu1  ;;  %v1010_v52 = vadd.f32 %v978_v57, %v2224_v1  ;;  %v1011_v60 = vadd.f32 %v979_v63, %v2214_v61 }
 0x262   : > { %1064 = vst [vmem:[%s2302_s24 + $0x80] sm:$0xff] %v1032_v35  ;;  %v1033_v21 = vadd.f32 %v1001_v56, %v937_v9  ;;  %v938_v28 = vmul.f32 0.1, %v1572_v10  ;;  %1585 = vtanh.f32 %v872_v48  ;;  %v874_v53 = vadd.f32 %v873_v14, %v2276_v31  ;;  %v981_v48 = vld [vmem:[%s2102_s9 + $0xe8] sm:$0xff] }
 0x263   : > { %v1574_v16 = vpop.eup %1573  ;;  %v875_v23 = vpop.f32.mrf.mxu1  ;;  %v1012_v10 = vadd.f32 %v980_v25, %v2237_v6  ;;  %v1014_v6 = vadd.f32 %v982_v15, %v2240_v7 }
 0x264   : > { %1065 = vst [vmem:[%s2302_s24 + $0x88] sm:$0xff] %v1033_v21  ;;  %v1034_v29 = vadd.f32 %v1002_v5, %v938_v28  ;;  %v939_v19 = vmul.f32 0.1, %v1574_v16  ;;  %1587 = vtanh.f32 %v874_v53  ;;  %v876_v49 = vadd.f32 %v875_v23, %v2278_v32  ;;  %v983_v16 = vld [vmem:[%s2102_s9 + $0xf8] sm:$0xff]  ;;  %s1081_s9 = scalar_lea.sflag [#allocation4], %s2088_s27 }
 0x265   : > { %v1576_v46 = vpop.eup %1575  ;;  %v879_v33 = vpop.f32.mrf.mxu1  ;;  %v1013_v21 = vadd.f32 %v981_v48, %v2227_v2 }
 0x266   : > { %1066 = vst [vmem:[%s2302_s24 + $0x90] sm:$0xff] %v1034_v29  ;;  %v1035_v30 = vadd.f32 %v1003_v13, %v939_v19  ;;  %v940_v36 = vmul.f32 0.1, %v1576_v46  ;;  %1589 = vtanh.f32 %v876_v49  ;;  %v880_v58 = vadd.f32 %v879_v33, %v2276_v31 }
 0x267   : > { %v1578_v11 = vpop.eup %1577  ;;  %v881_v38 = vpop.f32.mrf.mxu1  ;;  %v1015_v29 = vadd.f32 %v983_v16, %v2230_v3 }
 0x268   : > { %1067 = vst [vmem:[%s2302_s24 + $0x98] sm:$0xff] %v1035_v30  ;;  %v1036_v20 = vadd.f32 %v1004_v17, %v940_v36  ;;  %v941_v40 = vmul.f32 0.1, %v1578_v11  ;;  %1591 = vtanh.f32 %v880_v58  ;;  %v882_v54 = vadd.f32 %v881_v38, %v2278_v32 }
 0x269   : > { %v1580_v41 = vpop.eup %1579  ;;  %v883_v47 = vpop.f32.mrf.mxu1 }
 0x26a   : > { %1068 = vst [vmem:[%s2302_s24 + $0xa0] sm:$0xff] %v1036_v20  ;;  %v1037_v43 = vadd.f32 %v1005_v26, %v941_v40  ;;  %v942_v44 = vmul.f32 0.1, %v1580_v41  ;;  %1593 = vtanh.f32 %v882_v54  ;;  %v884_v59 = vadd.f32 %v883_v47, %v2276_v31 }
 0x26b   : > { %v1582_v34 = vpop.eup %1581  ;;  %v885_v50 = vpop.f32.mrf.mxu1 }
 0x26c   : > { %1069 = vst [vmem:[%s2302_s24 + $0xa8] sm:$0xff] %v1037_v43  ;;  %v1038_v39 = vadd.f32 %v1006_v37, %v942_v44  ;;  %v943_v51 = vmul.f32 0.1, %v1582_v34  ;;  %1595 = vtanh.f32 %v884_v59  ;;  %v886_v55 = vadd.f32 %v885_v50, %v2278_v32 }
 0x26d   : > { %v1584_v56 = vpop.eup %1583 }
 0x26e   : > { %1070 = vst [vmem:[%s2302_s24 + $0xb0] sm:$0xff] %v1038_v39  ;;  %v1039_v31 = vadd.f32 %v1007_v42, %v943_v51  ;;  %v944_v62 = vmul.f32 0.1, %v1584_v56  ;;  %1597 = vtanh.f32 %v886_v55 }
 0x26f   : > { %v1586_v0 = vpop.eup %1585 }
 0x270   : > { %1071 = vst [vmem:[%s2302_s24 + $0xb8] sm:$0xff] %v1039_v31  ;;  %v1040_v4 = vadd.f32 %v1008_v45, %v944_v62  ;;  %v945_v32 = vmul.f32 0.1, %v1586_v0 }
 0x271   : > { %v1588_v5 = vpop.eup %1587 }
 0x272   : > { %1072 = vst [vmem:[%s2302_s24 + $0xc0] sm:$0xff] %v1040_v4  ;;  %v1041_v8 = vadd.f32 %v1009_v27, %v945_v32  ;;  %v946_v35 = vmul.f32 0.1, %v1588_v5 }
 0x273   : > { %v1590_v9 = vpop.eup %1589 }
 0x274   : > { %1073 = vst [vmem:[%s2302_s24 + $0xc8] sm:$0xff] %v1041_v8  ;;  %v1042_v1 = vadd.f32 %v1010_v52, %v946_v35  ;;  %v947_v13 = vmul.f32 0.1, %v1590_v9 }
 0x275   : > { %v1592_v14 = vpop.eup %1591 }
 0x276   : > { %1074 = vst [vmem:[%s2302_s24 + $0xd0] sm:$0xff] %v1042_v1  ;;  %v1043_v61 = vadd.f32 %v1011_v60, %v947_v13  ;;  %v948_v28 = vmul.f32 0.1, %v1592_v14 }
 0x277   : > { %v1594_v53 = vpop.eup %1593 }
 0x278   : > { %1075 = vst [vmem:[%s2302_s24 + $0xd8] sm:$0xff] %v1043_v61  ;;  %v1044_v17 = vadd.f32 %v1012_v10, %v948_v28  ;;  %v949_v23 = vmul.f32 0.1, %v1594_v53 }
 0x279   : > { %v1596_v24 = vpop.eup %1595 }
 0x27a   : > { %1076 = vst [vmem:[%s2302_s24 + $0xe0] sm:$0xff] %v1044_v17  ;;  %v1045_v2 = vadd.f32 %v1013_v21, %v949_v23  ;;  %v950_v19 = vmul.f32 0.1, %v1596_v24 }
 0x27b   : > { %v1598_v49 = vpop.eup %1597 }
 0x27c   : > { %1077 = vst [vmem:[%s2302_s24 + $0xe8] sm:$0xff] %v1045_v2  ;;  %v1046_v46 = vadd.f32 %v1014_v6, %v950_v19  ;;  %v951_v26 = vmul.f32 0.1, %v1598_v49 }
 0x27e   : > { %1078 = vst [vmem:[%s2302_s24 + $0xf0] sm:$0xff] %v1046_v46  ;;  %v1047_v3 = vadd.f32 %v1015_v29, %v951_v26 }
 0x280   : > { %1079 = vst [vmem:[%s2302_s24 + $0xf8] sm:$0xff] %v1047_v3 }
 0x281   : > { %1720 = shalt.err (!%p1717_p2)
}
 0x282   : > { %s1721_s28 = scalar_lea.hbm %s2416_s5, 4096  ;;  %s1725_s2 = scalar_lea.hbm %s2534_s16, 16384 }
 0x283   : > { %p1722_p11 = scmp.ne.s32.totalorder %s2416_s5, %s1721_s28  ;;  %p1726_p1 = scmp.lt.s32.totalorder %s2416_s5, %s2534_s16 }
 0x284   : > { %p1727_p4 = scmp.lt.s32.totalorder %s1725_s2, %s1721_s28 }
 0x285   : > { %p1723_p10 = pnand %p1722_p11, %p2019_p9 }
 0x286   : > { %p1728_p6 = por %p1727_p4, %p1726_p1 }
 0x287   : > { %p1724_p3 = pneg %p1723_p10 }
 0x289   : > { %p1729_p0 = pnand %p1728_p6, %p1724_p3 }
 0x28b   : > { %1732 = shalt.err (!%p1729_p0)
}
 0x28c   : > { %s1853_s19 = smov 256   ;;  %s1854_s12 = smov 16  }
 0x28d   : > { %1370 = dma.vmem_to_hbm [thread:$0]  (%p2019_p9), %s2418_s4, 4096, %s2416_s5, %s1081_s9, %s1853_s19, %s1853_s19, %s1854_s12  }
 0x28e PF: > { %s2535_s0 = sld [smem:[#allocation16_spill]]  ;;  %p1395_p8 = scmp.ge.s32.totalorder %s1839_s7, 2 }
 0x28f   : > { %s2536_s13 = sld [smem:[#allocation19_spill]] }
 0x294   : > { %s1112_s8 = sand.u32 1, %s2535_s0  }
 0x295   : > { %p2537_p7 = scmp.ne.s32.totalorder %s2536_s13, 0  ;;  %s1113_s10 = scalar_lea.sflag [#allocation4], %s1112_s8 }
 0x297   : > { %p1387_p12 = pnand %p1395_p8, %p2537_p7 }
 0x299   : > { %p1388_p13 = pneg %p1387_p12 }
 0x29b   : > { %1794 = dma.done.wait (%p1388_p13), %s1113_s10, 4096  }
 0x29c   : > { %1796 = vsyncadd (%p1388_p13), %s1113_s10, 4294963200  ;;  %s26_s7 = sadd.s32 1, %s1839_s7   ;;  %s2538_s15 = sld [smem:[#allocation20_spill]] }
 0x29d   : > { %p23_p5 = scmp.ge.s32.totalorder %s26_s7, 6   ;;  %s2539_s4 = sld [smem:[#allocation22_spill]] }
 0x29e   : > { %s2540_s21 = smov %s1803_s22  ;;  %s2541_s22 = smov %s1807_s23 }
 0x29f   : > { %s2542_s23 = smov %s2063_s18  ;;  %s2543_s24 = smov %s1815_s25 }
 0x2a0   : > { %s2544_s25 = smov %s1819_s26  ;;  %s2545_s26 = smov %s2036_s6 }
 0x2a1   : > { %s2546_s27 = smov %s1831_s29  ;;  %s2547_s28 = smov %s1835_s30 }
 0x2a2   : > { %s2548_s29 = smov %s2538_s15  ;;  %25 = sbr.rel (!%p23_p5) target bundleno = 18 (0x12), region = 110 }
 0x2a3   : > { %s2549_s30 = smov %s2539_s4 }
 0x2a7   :  { %1118 = vsyncpa [#allocation3], 1 }
 0x2a8   :  { %1120 = vsyncpa [#allocation3 + $0x1], 1 }
 0x2a9   :  { %1121 = vsyncpa [#allocation6], 1 }
 0x2aa   :  { %1123 = vsyncpa [#allocation6 + $0x1], 1 }
 0x2ab   :  { %1124 = vsyncpa [#allocation9], 1 }
 0x2ac   :  { %1125 = vsyncpa [#allocation4], 1 }
 0x2ad   :  { %1127 = vsyncpa [#allocation4 + $0x1], 1 }

</bundles_post_ra>
